<compile_context>
chip_gen: v7x
topology: tpu7x:2x2x1
jax: 0.10.0
libtpu: 0.0.40
codegen_flags: <defaults>
</compile_context>

<pallas_src>
import functools

import jax
import jax.numpy as jnp
from jax.experimental import pallas as pl
from jax.experimental.pallas import tpu as pltpu


def _round_up(x, m):
    return (x + m - 1) // m * m


@functools.lru_cache(maxsize=1)
def _vmem_cap_bytes():
    """Physical VMEM per core (64 MiB v7x, 128 MiB v5e/v6e); safe fallback 64 MiB."""
    try:
        return int(pltpu.get_tpu_info().vmem_capacity_bytes)
    except Exception:
        return 64 << 20


def _make_fused_mlp_kernel(n_linear):
    """Build the fused kernel for `n_linear` Linear layers.

    Kernel refs (in order): x, (w_k, pack_k) for k in range(n_linear), out, fingerprint.
    w_k is bf16 (in_pad, out_pad); pack_k is f32 (8, out_pad): row 0 = bias,
    rows 1/2 = BN scale/shift (only populated for the LAST hidden layer — all other
    hidden BNs are folded into the next layer's weight/bias at prepare time).
    """

    def kernel(*refs):
        x_ref = refs[0]
        out_ref = refs[1 + 2 * n_linear]
        fp_ref = refs[2 + 2 * n_linear]

        h = x_ref[...]                                        # bf16 input tile
        # Hidden layers: Linear(+folded previous eval-BN) -> ReLU.
        # Dropout is identity in eval mode (training=False).
        for k in range(n_linear - 1):
            w_ref = refs[1 + 2 * k]
            p_ref = refs[2 + 2 * k]
            acc = jnp.dot(h.astype(jnp.bfloat16), w_ref[...],
                          preferred_element_type=jnp.float32)
            h = jnp.maximum(acc + p_ref[0:1, :], 0.0)         # bias + ReLU, f32

        # Last hidden layer's BN stays explicit: its output is the fingerprint.
        p_last = refs[2 + 2 * (n_linear - 2)]
        h = h * p_last[1:2, :] + p_last[2:3, :]
        fp_ref[...] = h.astype(fp_ref.dtype)                  # bf16 writeback

        w_ref = refs[1 + 2 * (n_linear - 1)]
        b_ref = refs[2 + 2 * (n_linear - 1)]
        y = jnp.dot(h.astype(jnp.bfloat16), w_ref[...],
                    preferred_element_type=jnp.float32) + b_ref[0:1, :]
        out_ref[...] = y.astype(out_ref.dtype)

    return kernel


def prepare_params(params, eps=1e-5):
    """One-time parameter preprocessing (kept OUT of the per-forward hot path).

    * Folds eval-mode BatchNorm1d of hidden layer k into layer k+1's weight/bias
      (exact in eval: dropout is identity). The last hidden layer's BN is kept
      explicit because its post-BN output is the fingerprint.
    * Transposes Linear weights to (in, out), zero-pads feature dims to multiples
      of 128, casts weights to bf16 (native MXU dtype; halves VMEM/DMA bytes).
    * Packs bias / BN scale / BN shift into a single f32 (8, N_pad) slab per layer.
    """
    n = len(params)
    Ws = [p["w"].astype(jnp.float32) for p in params]          # (out, in)
    bs = [p["b"].astype(jnp.float32) for p in params]
    scales, shifts = [], []
    for k in range(n - 1):
        p = params[k]
        inv_std = 1.0 / jnp.sqrt(p["var"].astype(jnp.float32) + eps)
        scale = p["gamma"].astype(jnp.float32) * inv_std
        shift = p["beta"].astype(jnp.float32) - p["mean"].astype(jnp.float32) * scale
        scales.append(scale)
        shifts.append(shift)

    # y_{k+1} = W_{k+1}(scale_k*a + shift_k) + b_{k+1}
    #         = (W_{k+1} diag(scale_k)) a + (W_{k+1} shift_k + b_{k+1})
    for k in range(n - 2):                                     # every hidden BN but the last
        bs[k + 1] = bs[k + 1] + Ws[k + 1] @ shifts[k]
        Ws[k + 1] = Ws[k + 1] * scales[k][None, :]

    prepared = []
    for k in range(n):
        fan_out, fan_in = Ws[k].shape
        in_pad, out_pad = _round_up(fan_in, 128), _round_up(fan_out, 128)
        w_t = jnp.zeros((in_pad, out_pad), jnp.float32)
        w_t = w_t.at[:fan_in, :fan_out].set(Ws[k].T)
        pack = jnp.zeros((8, out_pad), jnp.float32)
        pack = pack.at[0, :fan_out].set(bs[k])
        if k == n - 2:                                         # explicit BN for fingerprint
            pack = pack.at[1, :fan_out].set(scales[k])
            pack = pack.at[2, :fan_out].set(shifts[k])
        prepared.append(dict(w=w_t.astype(jnp.bfloat16), pack=pack))
    return prepared


@functools.partial(jax.jit, static_argnames=("dims",))
def mlp_forward(prepared, x, *, dims):
    """Replicates MLP.forward in eval mode: returns (output, fingerprint), both f32."""
    n_linear = len(dims) - 1
    B, d_in = x.shape

    d_in_pad = _round_up(d_in, 128)
    fp_pad = prepared[n_linear - 2]["w"].shape[1]   # padded last-hidden width
    out_pad = prepared[n_linear - 1]["w"].shape[1]  # padded output width

    # Batch tiling (16-row granularity = bf16 sublane packing):
    #  * row cap 512 (1024 on 128 MiB-VMEM parts),
    #  * balanced tile size -> minimal trailing-tile padding,
    #  * >= 2 tiles when the batch allows so both v7x TCs / the DMA pipeline engage.
    vmem_cap = _vmem_cap_bytes()
    row_cap = 1024 if vmem_cap >= (100 << 20) else 512
    Bp = _round_up(B, 16)
    n_tiles = max(pl.cdiv(Bp, row_cap), 2 if Bp >= 32 else 1)
    tm = _round_up(pl.cdiv(Bp, n_tiles), 16)
    b_pad = _round_up(Bp, tm)

    x_pad = jnp.zeros((b_pad, d_in_pad), jnp.bfloat16)
    x_pad = x_pad.at[:B, :d_in].set(x.astype(jnp.bfloat16))

    # Weights / packs: whole-array VMEM residents, single-buffered (constant across
    # the batch grid, so double-buffering them would only waste VMEM).
    resident_spec = pl.BlockSpec(memory_space=pltpu.MemorySpace.VMEM)
    in_specs = [pl.BlockSpec((tm, d_in_pad), lambda i: (i, 0))]
    operands = [x_pad]
    resident_bytes = 0
    flops = 0
    for k in range(n_linear):
        w, pk = prepared[k]["w"], prepared[k]["pack"]
        in_specs += [resident_spec, resident_spec]
        operands += [w, pk]
        resident_bytes += w.size * w.dtype.itemsize + pk.size * pk.dtype.itemsize
        flops += 2 * b_pad * w.shape[0] * w.shape[1]

    out_shape = (jax.ShapeDtypeStruct((b_pad, out_pad), jnp.float32),
                 jax.ShapeDtypeStruct((b_pad, fp_pad), jnp.bfloat16))
    out_specs = (pl.BlockSpec((tm, out_pad), lambda i: (i, 0)),
                 pl.BlockSpec((tm, fp_pad), lambda i: (i, 0)))

    # Explicit scoped-VMEM budget: resident weights + double-buffered streamed blocks
    # + margin, clamped under physical VMEM (64 MiB v7x / 128 MiB v5e,v6e).
    stream_bytes = 2 * tm * (d_in_pad * 2 + out_pad * 4 + fp_pad * 2)
    vmem_limit = min(max(resident_bytes + stream_bytes + (4 << 20), 32 << 20),
                     vmem_cap - (2 << 20))

    io_bytes = (x_pad.size * 2 + resident_bytes
                + b_pad * out_pad * 4 + b_pad * fp_pad * 2)

    out_p, fp_p = pl.pallas_call(
        _make_fused_mlp_kernel(n_linear),
        out_shape=out_shape,
        grid=(b_pad // tm,),
        in_specs=in_specs,
        out_specs=out_specs,
        compiler_params=pltpu.CompilerParams(
            dimension_semantics=("parallel",),     # batch tiles split across TCs
            vmem_limit_bytes=int(vmem_limit)),
        cost_estimate=pl.CostEstimate(flops=int(flops), transcendentals=0,
                                      bytes_accessed=int(io_bytes)),
    )(*operands)

    # Strip padding; the fp bf16->f32 cast fuses with the unpadding slice.
    return out_p[:B, :dims[-1]], fp_p[:B, :dims[-2]].astype(jnp.float32)


def init_mlp_params(key, layersize):
    """Deterministic parameters matching nn.Linear / nn.BatchNorm1d shapes."""
    params = []
    for k in range(len(layersize) - 1):
        fan_in, fan_out = layersize[k], layersize[k + 1]
        key, kw, kb, kg, kbe, km, kv = jax.random.split(key, 7)
        bound = 1.0 / jnp.sqrt(fan_in)
        w = jax.random.uniform(kw, (fan_out, fan_in), jnp.float32, -bound, bound)
        b = jax.random.uniform(kb, (fan_out,), jnp.float32, -bound, bound)
        # BatchNorm1d(fan_out): weight, bias, running_mean, running_var (eval stats)
        gamma = 1.0 + 0.1 * jax.random.normal(kg, (fan_out,), jnp.float32)
        beta = 0.1 * jax.random.normal(kbe, (fan_out,), jnp.float32)
        mean = 0.1 * jax.random.normal(km, (fan_out,), jnp.float32)
        var = jnp.abs(1.0 + 0.1 * jax.random.normal(kv, (fan_out,), jnp.float32))
        params.append(dict(w=w, b=b, gamma=gamma, beta=beta, mean=mean, var=var))
    return params


def mlp_reference(params, x, eps=1e-5):
    """Pure-JAX eval-mode reference of MLP.forward (for correctness check)."""
    # TODO(synk): F.dropout with training=True is not implemented (eval-mode identity).
    n = len(params)
    fp = None
    for k in range(n - 1):
        p = params[k]
        x = jnp.maximum(x @ p["w"].T + p["b"], 0.0)
        x = (x - p["mean"]) / jnp.sqrt(p["var"] + eps) * p["gamma"] + p["beta"]
        if k == n - 2:
            fp = x
    p = params[-1]
    return x @ p["w"].T + p["b"], fp


if __name__ == "__main__":
    layersize = [32, 64, 48, 16]   # 3 Linear layers; fingerprint dim = 48
    dropout = 0.5                  # unused in eval mode
    batch = 8

    key = jax.random.PRNGKey(0)
    key, kx = jax.random.split(key)
    x = jax.random.normal(kx, (batch, layersize[0]), jnp.float32)

    params = init_mlp_params(key, layersize)
    prepared = prepare_params(params)          # one-time prep, out of the hot path

    out, fingerprint = mlp_forward(prepared, x, dims=tuple(layersize))
    jax.block_until_ready(out)
    jax.block_until_ready(fingerprint)

    ref_out, ref_fp = mlp_reference(params, x)
    assert out.shape == (batch, layersize[-1])
    assert fingerprint.shape == (batch, layersize[-2])
    # Tolerance widened slightly for the bf16 MXU path (weights + activations in bf16).
    assert jnp.allclose(out, ref_out, atol=5e-2, rtol=5e-2)
    assert jnp.allclose(fingerprint, ref_fp, atol=5e-2, rtol=5e-2)
    print("KERNEL_OK")
</pallas_src>

<mosaic_0001>
module attributes {stable_mosaic.version = 11 : i64} {
  func.func @kernel(%arg0: i32, %arg1: memref<16x128xbf16, #tpu.memory_space<vmem>>, %arg2: memref<128x128xbf16, #tpu.memory_space<vmem>>, %arg3: memref<8x128xf32, #tpu.memory_space<vmem>>, %arg4: memref<128x128xbf16, #tpu.memory_space<vmem>>, %arg5: memref<8x128xf32, #tpu.memory_space<vmem>>, %arg6: memref<128x128xbf16, #tpu.memory_space<vmem>>, %arg7: memref<8x128xf32, #tpu.memory_space<vmem>>, %arg8: memref<16x128xf32, #tpu.memory_space<vmem>>, %arg9: memref<16x128xbf16, #tpu.memory_space<vmem>>) attributes {dimension_semantics = [#tpu.dimension_semantics<parallel>], iteration_bounds = array<i64: 1>, scalar_prefetch = 0 : i64, scratch_operands = 0 : i64, tpu.core_type = #tpu.core_type<tc>, window_params = [{transform_indices = @transform_0, window_bounds = array<i64: 16, 128>}, {pipeline_mode = #tpu.pipeline_mode<synchronous>, transform_indices = @transform_1, window_bounds = array<i64: 128, 128>}, {pipeline_mode = #tpu.pipeline_mode<synchronous>, transform_indices = @transform_2, window_bounds = array<i64: 8, 128>}, {pipeline_mode = #tpu.pipeline_mode<synchronous>, transform_indices = @transform_3, window_bounds = array<i64: 128, 128>}, {pipeline_mode = #tpu.pipeline_mode<synchronous>, transform_indices = @transform_4, window_bounds = array<i64: 8, 128>}, {pipeline_mode = #tpu.pipeline_mode<synchronous>, transform_indices = @transform_5, window_bounds = array<i64: 128, 128>}, {pipeline_mode = #tpu.pipeline_mode<synchronous>, transform_indices = @transform_6, window_bounds = array<i64: 8, 128>}, {transform_indices = @transform_7, window_bounds = array<i64: 16, 128>}, {transform_indices = @transform_8, window_bounds = array<i64: 16, 128>}]} {
    %c0 = arith.constant 0 : index
    %c0_0 = arith.constant 0 : index
    %0 = vector.load %arg1[%c0, %c0_0] : memref<16x128xbf16, #tpu.memory_space<vmem>>, vector<16x128xbf16>
    %c0_1 = arith.constant 0 : index
    %c0_2 = arith.constant 0 : index
    %1 = vector.load %arg2[%c0_1, %c0_2] : memref<128x128xbf16, #tpu.memory_space<vmem>>, vector<128x128xbf16>
    %cst = arith.constant dense<0.000000e+00> : vector<16x128xf32>
    %2 = tpu.matmul %0, %1, %cst {dimension_numbers = #tpu.dot_dimension_numbers<[1], [0], [0], [1], [0, 0, 1, 1], [], []>} : vector<16x128xbf16>, vector<128x128xbf16>, vector<16x128xf32> -> vector<16x128xf32>
    %c0_3 = arith.constant 0 : index
    %c0_4 = arith.constant 0 : index
    %3 = vector.load %arg3[%c0_3, %c0_4] : memref<8x128xf32, #tpu.memory_space<vmem>>, vector<1x128xf32>
    %4 = vector.broadcast %3 : vector<1x128xf32> to vector<16x128xf32>
    %5 = arith.addf %2, %4 : vector<16x128xf32>
    %cst_5 = arith.constant 0.000000e+00 : f32
    %6 = vector.broadcast %cst_5 : f32 to vector<16x128xf32>
    %7 = arith.maximumf %5, %6 : vector<16x128xf32>
    %8 = arith.truncf %7 : vector<16x128xf32> to vector<16x128xbf16>
    %c0_6 = arith.constant 0 : index
    %c0_7 = arith.constant 0 : index
    %9 = vector.load %arg4[%c0_6, %c0_7] : memref<128x128xbf16, #tpu.memory_space<vmem>>, vector<128x128xbf16>
    %cst_8 = arith.constant dense<0.000000e+00> : vector<16x128xf32>
    %10 = tpu.matmul %8, %9, %cst_8 {dimension_numbers = #tpu.dot_dimension_numbers<[1], [0], [0], [1], [0, 0, 1, 1], [], []>} : vector<16x128xbf16>, vector<128x128xbf16>, vector<16x128xf32> -> vector<16x128xf32>
    %c0_9 = arith.constant 0 : index
    %c0_10 = arith.constant 0 : index
    %11 = vector.load %arg5[%c0_9, %c0_10] : memref<8x128xf32, #tpu.memory_space<vmem>>, vector<1x128xf32>
    %12 = vector.broadcast %11 : vector<1x128xf32> to vector<16x128xf32>
    %13 = arith.addf %10, %12 : vector<16x128xf32>
    %cst_11 = arith.constant 0.000000e+00 : f32
    %14 = vector.broadcast %cst_11 : f32 to vector<16x128xf32>
    %15 = arith.maximumf %13, %14 : vector<16x128xf32>
    %c1 = arith.constant 1 : index
    %c0_12 = arith.constant 0 : index
    %16 = vector.load %arg5[%c1, %c0_12] : memref<8x128xf32, #tpu.memory_space<vmem>>, vector<1x128xf32>
    %17 = vector.broadcast %16 : vector<1x128xf32> to vector<16x128xf32>
    %18 = arith.mulf %15, %17 : vector<16x128xf32>
    %c2 = arith.constant 2 : index
    %c0_13 = arith.constant 0 : index
    %19 = vector.load %arg5[%c2, %c0_13] : memref<8x128xf32, #tpu.memory_space<vmem>>, vector<1x128xf32>
    %20 = vector.broadcast %19 : vector<1x128xf32> to vector<16x128xf32>
    %21 = arith.addf %18, %20 : vector<16x128xf32>
    %22 = arith.truncf %21 : vector<16x128xf32> to vector<16x128xbf16>
    %c0_14 = arith.constant 0 : index
    %c0_15 = arith.constant 0 : index
    %23 = vector.load %arg9[%c0_14, %c0_15] : memref<16x128xbf16, #tpu.memory_space<vmem>>, vector<16x128xbf16>
    tpu.vector_store %arg9[%c0_14, %c0_15], %22 {strides = array<i32>} : memref<16x128xbf16, #tpu.memory_space<vmem>>, vector<16x128xbf16>,
    %24 = arith.truncf %21 : vector<16x128xf32> to vector<16x128xbf16>
    %c0_16 = arith.constant 0 : index
    %c0_17 = arith.constant 0 : index
    %25 = vector.load %arg6[%c0_16, %c0_17] : memref<128x128xbf16, #tpu.memory_space<vmem>>, vector<128x128xbf16>
    %cst_18 = arith.constant dense<0.000000e+00> : vector<16x128xf32>
    %26 = tpu.matmul %24, %25, %cst_18 {dimension_numbers = #tpu.dot_dimension_numbers<[1], [0], [0], [1], [0, 0, 1, 1], [], []>} : vector<16x128xbf16>, vector<128x128xbf16>, vector<16x128xf32> -> vector<16x128xf32>
    %c0_19 = arith.constant 0 : index
    %c0_20 = arith.constant 0 : index
    %27 = vector.load %arg7[%c0_19, %c0_20] : memref<8x128xf32, #tpu.memory_space<vmem>>, vector<1x128xf32>
    %28 = vector.broadcast %27 : vector<1x128xf32> to vector<16x128xf32>
    %29 = arith.addf %26, %28 : vector<16x128xf32>
    %c0_21 = arith.constant 0 : index
    %c0_22 = arith.constant 0 : index
    %30 = vector.load %arg8[%c0_21, %c0_22] : memref<16x128xf32, #tpu.memory_space<vmem>>, vector<16x128xf32>
    tpu.vector_store %arg8[%c0_21, %c0_22], %29 {strides = array<i32>} : memref<16x128xf32, #tpu.memory_space<vmem>>, vector<16x128xf32>,
    return
  }
  func.func @transform_0(%arg0: i32) -> (i32, i32) {
    %c0_i32 = arith.constant 0 : i32
    %c0_i32_0 = arith.constant 0 : i32
    return %arg0, %c0_i32 : i32, i32
  }
  func.func @transform_1(%arg0: i32) -> (i32, i32) {
    %c0_i32 = arith.constant 0 : i32
    %c0_i32_0 = arith.constant 0 : i32
    %c0_i32_1 = arith.constant 0 : i32
    return %c0_i32, %c0_i32_0 : i32, i32
  }
  func.func @transform_2(%arg0: i32) -> (i32, i32) {
    %c0_i32 = arith.constant 0 : i32
    %c0_i32_0 = arith.constant 0 : i32
    %c0_i32_1 = arith.constant 0 : i32
    return %c0_i32, %c0_i32_0 : i32, i32
  }
  func.func @transform_3(%arg0: i32) -> (i32, i32) {
    %c0_i32 = arith.constant 0 : i32
    %c0_i32_0 = arith.constant 0 : i32
    %c0_i32_1 = arith.constant 0 : i32
    return %c0_i32, %c0_i32_0 : i32, i32
  }
  func.func @transform_4(%arg0: i32) -> (i32, i32) {
    %c0_i32 = arith.constant 0 : i32
    %c0_i32_0 = arith.constant 0 : i32
    %c0_i32_1 = arith.constant 0 : i32
    return %c0_i32, %c0_i32_0 : i32, i32
  }
  func.func @transform_5(%arg0: i32) -> (i32, i32) {
    %c0_i32 = arith.constant 0 : i32
    %c0_i32_0 = arith.constant 0 : i32
    %c0_i32_1 = arith.constant 0 : i32
    return %c0_i32, %c0_i32_0 : i32, i32
  }
  func.func @transform_6(%arg0: i32) -> (i32, i32) {
    %c0_i32 = arith.constant 0 : i32
    %c0_i32_0 = arith.constant 0 : i32
    %c0_i32_1 = arith.constant 0 : i32
    return %c0_i32, %c0_i32_0 : i32, i32
  }
  func.func @transform_7(%arg0: i32) -> (i32, i32) {
    %c0_i32 = arith.constant 0 : i32
    %c0_i32_0 = arith.constant 0 : i32
    return %arg0, %c0_i32 : i32, i32
  }
  func.func @transform_8(%arg0: i32) -> (i32, i32) {
    %c0_i32 = arith.constant 0 : i32
    %c0_i32_0 = arith.constant 0 : i32
    return %arg0, %c0_i32 : i32, i32
  }
}

</mosaic_0001>

<bundles_post_ra>
// kernel: mlp_forward.1
= control target key start
LH: loop header
LB: loop body
LE: loop exit
PB: predicated region body
PF: predicated region fallthrough
CT: control target
= control target key end

     0   :  { %14 = vsyncpa [#allocation3], 0  ;;  %s838_s0 = inlined_call_operand.vmem [shape: bf16[16,128], index: 0, kind: input, shape index: {}]   ;;  %s839_s1 = inlined_call_operand.hbm [shape: bf16[128,128], index: 1, kind: input, shape index: {}]   ;;  %s840_s2 = inlined_call_operand.vmem [shape: f32[8,128], index: 2, kind: input, shape index: {}]   ;;  %s841_s3 = inlined_call_operand.hbm [shape: bf16[128,128], index: 3, kind: input, shape index: {}]   ;;  %s842_s4 = inlined_call_operand.vmem [shape: f32[8,128], index: 4, kind: input, shape index: {}]   ;;  %s843_s5 = inlined_call_operand.hbm [shape: bf16[128,128], index: 5, kind: input, shape index: {}]   ;;  %s844_s6 = inlined_call_operand.vmem [shape: f32[8,128], index: 6, kind: input, shape index: {}]   ;;  %s845_s7 = inlined_call_operand.vmem [shape: f32[16,128], index: 7, kind: output, shape index: {0}]   ;;  %s846_s8 = inlined_call_operand.vmem [shape: bf16[16,128], index: 8, kind: output, shape index: {1}]  }
   0x1   :  { %15 = vsyncpa [#allocation5], 0  ;;  %s677_s27 = smov [#allocation4]   ;;  %s678_s29 = smov [#allocation2]  }
   0x2   :  { %s37_s28 = sshll.u32 %s677_s27, 4  ;;  %s23_s30 = sshll.u32 %s678_s29, 4  ;;  %s38_s28 = int_to_ptr.vmem [resolvable:$true] %s37_s28  ;;  %s729_s30 = int_to_ptr.vmem [resolvable:$true] %s23_s30 }
   0x3   :  { %s607_s11 = scalar_lea.hbm %s841_s3, 1024 }
   0x4   :  { %p608_p0 = scmp.ne.s32.totalorder %s841_s3, %s607_s11  ;;  %p611_p1 = scmp.lt.u32.totalorder %s607_s11, %s841_s3 }
   0x6   :  { %p613_p2 = pnand %p611_p1, %p608_p0 }
   0x8   :  { %616 = shalt.err (!%p613_p2)
}
   0x9   :  { %s617_s16 = scalar_lea.vmem %s38_s28, 1024  ;;  %p622_p4 = scmp.lt.s32.totalorder %s38_s28, %s38_s28 }
   0xa   :  { %p618_p3 = scmp.ne.s32.totalorder %s38_s28, %s617_s16  ;;  %p623_p5 = scmp.lt.s32.totalorder %s617_s16, %s617_s16 }
   0xc   :  { %p624_p6 = por %p623_p5, %p622_p4 }
   0xe   :  { %p625_p7 = pnand %p624_p6, %p618_p3 }
  0x10   :  { %628 = shalt.err (!%p625_p7)
}
  0x11   :  { %s679_s17 = smov 64   ;;  %s680_s18 = smov 4  }
  0x12   :  { %43 = dma.hbm_to_vmem [thread:$0]  %s841_s3, 1024, %s38_s28, [#allocation5], %s679_s17, %s679_s17, %s680_s18  }
  0x13   :  { %s629_s23 = scalar_lea.hbm %s839_s1, 1024 }
  0x14   :  { %p630_p8 = scmp.ne.s32.totalorder %s839_s1, %s629_s23  ;;  %p633_p9 = scmp.lt.u32.totalorder %s629_s23, %s839_s1 }
  0x16   :  { %p635_p10 = pnand %p633_p9, %p630_p8 }
  0x18   :  { %638 = shalt.err (!%p635_p10)
}
  0x19   :  { %s639_s29 = scalar_lea.vmem %s729_s30, 1024  ;;  %p644_p12 = scmp.lt.s32.totalorder %s729_s30, %s729_s30 }
  0x1a   :  { %p640_p11 = scmp.ne.s32.totalorder %s729_s30, %s639_s29  ;;  %p645_p13 = scmp.lt.s32.totalorder %s639_s29, %s639_s29 }
  0x1c   :  { %p646_p0 = por %p645_p13, %p644_p12 }
  0x1e   :  { %p647_p1 = pnand %p646_p0, %p640_p11 }
  0x20   :  { %650 = shalt.err (!%p647_p1)
}
  0x21   :  { %29 = dma.hbm_to_vmem [thread:$0]  %s839_s1, 1024, %s729_s30, [#allocation3], %s679_s17, %s679_s17, %s680_s18  }
  0x22   :  { %s681_s9 = smov [#allocation6]   ;;  %s651_s13 = scalar_lea.hbm %s843_s5, 1024 }
  0x23   :  { %s51_s10 = sshll.u32 %s681_s9, 4  ;;  %p652_p2 = scmp.ne.s32.totalorder %s843_s5, %s651_s13  ;;  %s52_s10 = int_to_ptr.vmem [resolvable:$true] %s51_s10 }
  0x24   :  { %p655_p3 = scmp.lt.u32.totalorder %s651_s13, %s843_s5 }
  0x26   :  { %p657_p4 = pnand %p655_p3, %p652_p2 }
  0x28   :  { %660 = shalt.err (!%p657_p4)
}
  0x29   :  { %s661_s20 = scalar_lea.vmem %s52_s10, 1024  ;;  %p666_p6 = scmp.lt.s32.totalorder %s52_s10, %s52_s10 }
  0x2a   :  { %p662_p5 = scmp.ne.s32.totalorder %s52_s10, %s661_s20  ;;  %p667_p7 = scmp.lt.s32.totalorder %s661_s20, %s661_s20 }
  0x2c   :  { %p668_p8 = por %p667_p7, %p666_p6 }
  0x2e   :  { %p669_p9 = pnand %p668_p8, %p662_p5 }
  0x30   :  { %672 = shalt.err (!%p669_p9)
}
  0x31   :  { %57 = dma.hbm_to_vmem [thread:$0]  %s843_s5, 1024, %s52_s10, [#allocation5], %s679_s17, %s679_s17, %s680_s18  }
  0x32   :  { %673 = dma.done.wait [#allocation3], 1024  }
  0x33   :  { %674 = vsyncadd [#allocation3], 4294966272 }
  0x34   :  { %675 = dma.done.wait [#allocation5], 2048  }
  0x35   :  { %676 = vsyncadd [#allocation5], 4294965248  ;;  %v682_v0 = vmov 0.0   ;;  %vm683_vm0 = vmmov 0   ;;  %v582_v1 = vld [vmem:[#allocation2] sm:$0xff]   ;;  %v583_v2 = vld [vmem:[#allocation2 + $0x8] sm:$0xff]  }
  0x36   :  { %515 = vmatprep.subr.bf16.mxu0 %v682_v0  ;;  %531 = vmatprep.mubr.msk.bf16.mxu0 %vm683_vm0, %v682_v0  ;;  %v584_v3 = vld [vmem:[#allocation2 + $0x10] sm:$0xff]   ;;  %v591_v4 = vld [vmem:[#allocation4] sm:$0xff]   ;;  %v585_v5 = vld [vmem:[#allocation2 + $0x18] sm:$0xff]  }
  0x37   :  { %535 = vmatprep.subr.bf16.mxu1 %v682_v0  ;;  %551 = vmatprep.mubr.msk.bf16.mxu1 %vm683_vm0, %v682_v0  ;;  %v592_v6 = vld [vmem:[#allocation4 + $0x8] sm:$0xff]   ;;  %v586_v7 = vld [vmem:[#allocation2 + $0x20] sm:$0xff]   ;;  %v593_v8 = vld [vmem:[#allocation4 + $0x10] sm:$0xff]  }
  0x38   :  { %516 = vmatpush3.bf16.msra.mxu0 %v582_v1  ;;  %536 = vmatpush3.bf16.msra.mxu1 %v591_v4  ;;  %v587_v9 = vld [vmem:[#allocation2 + $0x28] sm:$0xff]   ;;  %v594_v10 = vld [vmem:[#allocation4 + $0x18] sm:$0xff]   ;;  %v588_v11 = vld [vmem:[#allocation2 + $0x30] sm:$0xff]  }
  0x39   :  { %517 = vmatprep.subr.bf16.mxu0 %v682_v0  ;;  %537 = vmatprep.subr.bf16.mxu1 %v682_v0  ;;  %v595_v12 = vld [vmem:[#allocation4 + $0x20] sm:$0xff]   ;;  %v589_v13 = vld [vmem:[#allocation2 + $0x38] sm:$0xff]   ;;  %v596_v14 = vld [vmem:[#allocation4 + $0x28] sm:$0xff]  }
  0x3a   :  { %v590_v15 = vld [vmem:[%s838_s0] sm:$0xff]   ;;  %v597_v16 = vld [vmem:[#allocation4 + $0x30] sm:$0xff]   ;;  %v598_v17 = vld [vmem:[#allocation4 + $0x38] sm:$0xff]  }
  0x3b   :  { %v599_v18 = vld [vmem:[#allocation6] sm:$0xff]   ;;  %v600_v19 = vld [vmem:[#allocation6 + $0x8] sm:$0xff]   ;;  %v601_v20 = vld [vmem:[#allocation6 + $0x10] sm:$0xff]  }
  0x3c   :  { %518 = vmatpush3.bf16.msra.mxu0 %v583_v2  ;;  %538 = vmatpush3.bf16.msra.mxu1 %v592_v6  ;;  %v602_v21 = vld [vmem:[#allocation6 + $0x18] sm:$0xff]   ;;  %v603_v22 = vld [vmem:[#allocation6 + $0x20] sm:$0xff]   ;;  %v604_v33 = vld [vmem:[#allocation6 + $0x28] sm:$0xff]  }
  0x3d   :  { %519 = vmatprep.subr.bf16.mxu0 %v682_v0  ;;  %539 = vmatprep.subr.bf16.mxu1 %v682_v0  ;;  %v449_v23 = vld [vmem:[%s840_s2] ss:$0 sm:$0xff]  ;;  %v605_v34 = vld [vmem:[#allocation6 + $0x30] sm:$0xff]   ;;  %v606_v35 = vld [vmem:[#allocation6 + $0x38] sm:$0xff]  }
  0x3e   :  { %v459_v36 = vld [vmem:[%s842_s4] ss:$0 sm:$0xff]  ;;  %v468_v40 = vld [vmem:[%s842_s4 + $0x1] ss:$0 sm:$0xff]  ;;  %v469_v47 = vld [vmem:[%s842_s4 + $0x2] ss:$0 sm:$0xff] }
  0x3f   :  { %v472_v52 = vld [vmem:[%s844_s6] ss:$0 sm:$0xff] }
  0x40   :  { %520 = vmatpush3.bf16.msra.mxu0 %v584_v3  ;;  %540 = vmatpush3.bf16.msra.mxu1 %v593_v8 }
  0x41   :  { %521 = vmatprep.subr.bf16.mxu0 %v682_v0  ;;  %541 = vmatprep.subr.bf16.mxu1 %v682_v0 }
  0x44   :  { %522 = vmatpush3.bf16.msra.mxu0 %v585_v5  ;;  %542 = vmatpush3.bf16.msra.mxu1 %v594_v10 }
  0x45   :  { %523 = vmatprep.subr.bf16.mxu0 %v682_v0  ;;  %543 = vmatprep.subr.bf16.mxu1 %v682_v0 }
  0x48   :  { %524 = vmatpush3.bf16.msra.mxu0 %v586_v7  ;;  %544 = vmatpush3.bf16.msra.mxu1 %v595_v12 }
  0x49   :  { %525 = vmatprep.subr.bf16.mxu0 %v682_v0  ;;  %545 = vmatprep.subr.bf16.mxu1 %v682_v0 }
  0x4c   :  { %526 = vmatpush3.bf16.msra.mxu0 %v587_v9  ;;  %546 = vmatpush3.bf16.msra.mxu1 %v596_v14 }
  0x4d   :  { %527 = vmatprep.subr.bf16.mxu0 %v682_v0  ;;  %547 = vmatprep.subr.bf16.mxu1 %v682_v0 }
  0x50   :  { %528 = vmatpush3.bf16.msra.mxu0 %v588_v11  ;;  %548 = vmatpush3.bf16.msra.mxu1 %v597_v16 }
  0x51   :  { %529 = vmatprep.subr.bf16.mxu0 %v682_v0  ;;  %549 = vmatprep.subr.bf16.mxu1 %v682_v0 }
  0x54   :  { %530 = vmatpush3.bf16.msra.mxu0 %v589_v13  ;;  %550 = vmatpush3.bf16.msra.mxu1 %v598_v17 }
  0x55   :  { %555 = vmatprep.subr.bf16.mxu0 %v682_v0 }
  0x57   :  { %532 = vmatmul.mubr.bf16.vlgmr.msra.gmra.mrb[0].mxu0 %v590_v15 }
  0x58   :  { %571 = vmatprep.mubr.msk.bf16.mxu0 %vm683_vm0, %v682_v0  ;;  %556 = vmatpush3.bf16.msra.mxu0 %v599_v18 }
  0x59   :  { %557 = vmatprep.subr.bf16.mxu0 %v682_v0 }
  0x5c   :  { %558 = vmatpush3.bf16.msra.mxu0 %v600_v19 }
  0x5d   :  { %559 = vmatprep.subr.bf16.mxu0 %v682_v0 }
  0x60   :  { %560 = vmatpush3.bf16.msra.mxu0 %v601_v20 }
  0x61   :  { %561 = vmatprep.subr.bf16.mxu0 %v682_v0 }
  0x64   :  { %562 = vmatpush3.bf16.msra.mxu0 %v602_v21 }
  0x65   :  { %563 = vmatprep.subr.bf16.mxu0 %v682_v0 }
  0x68   :  { %564 = vmatpush3.bf16.msra.mxu0 %v603_v22 }
  0x69   :  { %565 = vmatprep.subr.bf16.mxu0 %v682_v0 }
  0x6c   :  { %566 = vmatpush3.bf16.msra.mxu0 %v604_v33 }
  0x6d   :  { %567 = vmatprep.subr.bf16.mxu0 %v682_v0 }
  0x70   :  { %568 = vmatpush3.bf16.msra.mxu0 %v605_v34 }
  0x71   :  { %569 = vmatprep.subr.bf16.mxu0 %v682_v0 }
  0x74   :  { %570 = vmatpush3.bf16.msra.mxu0 %v606_v35 }
 0x12a   :  { %v181_v24 = vpop.f32.mrb[0].mxu0 }
 0x12b   :  { %v182_v25 = vadd.f32 %v449_v23, %v181_v24  ;;  %v533_v26 = vpop.f32.mrb[1].mxu0 }
 0x12c   :  { %v184_v27 = vpop.f32.mrb[2].mxu0 }
 0x12d   :  { %v185_v28 = vadd.f32 %v449_v23, %v184_v27  ;;  %v534_v29 = vpop.f32.mrb[3].mxu0  ;;  %v188_v30 = vmax.f32 %v182_v25, 0.0 }
 0x12f   :  { %v189_v31 = vmax.f32 %v185_v28, 0.0 }
 0x131   :  { %v190_v32 = vpack.c.bf16 %v189_v31, %v188_v30 }
 0x133   :  { %552 = vmatmul.mubr.bf16.vlgmr.msra.gmra.mrb[0].mxu1 %v190_v32 }
 0x206   :  { %v294_v37 = vpop.f32.mrb[0].mxu1 }
 0x207   :  { %v295_v38 = vadd.f32 %v459_v36, %v294_v37  ;;  %v553_v39 = vpop.f32.mrb[1].mxu1 }
 0x208   :  { %v297_v41 = vpop.f32.mrb[2].mxu1 }
 0x209   :  { %v301_v42 = vmax.f32 %v295_v38, 0.0  ;;  %v298_v43 = vadd.f32 %v459_v36, %v297_v41  ;;  %v554_v44 = vpop.f32.mrb[3].mxu1 }
 0x20b   :  { %v308_v45 = vmul.f32 %v468_v40, %v301_v42  ;;  %v302_v46 = vmax.f32 %v298_v43, 0.0 }
 0x20d   :  { %v309_v48 = vmul.f32 %v468_v40, %v302_v46  ;;  %v315_v49 = vadd.f32 %v469_v47, %v308_v45 }
 0x20f   :  { %v316_v50 = vadd.f32 %v469_v47, %v309_v48 }
 0x211   :  { %v317_v51 = vpack.c.bf16 %v316_v50, %v315_v49 }
 0x213   :  { %487 = vst [vmem:[%s846_s8] sm:$0xff] %v317_v51   ;;  %572 = vmatmul.mubr.bf16.vlgmr.msra.gmra.mrb[4].mxu0 %v317_v51 }
 0x2e6   :  { %v430_v53 = vpop.f32.mrb[4].mxu0 }
 0x2e7   :  { %v431_v54 = vadd.f32 %v472_v52, %v430_v53  ;;  %v573_v55 = vpop.f32.mrb[5].mxu0 }
 0x2e8   :  { %v433_v56 = vpop.f32.mrb[6].mxu0 }
 0x2e9   :  { %437 = vst [vmem:[%s845_s7] sm:$0xff] %v431_v54  ;;  %v434_v57 = vadd.f32 %v472_v52, %v433_v56  ;;  %v574_v58 = vpop.f32.mrb[7].mxu0 }
 0x2eb   :  { %438 = vst [vmem:[%s845_s7 + $0x8] sm:$0xff] %v434_v57 }
 0x2ec   :  { %447 = vsyncpa [#allocation3], 1 }
 0x2ed   :  { %448 = vsyncpa [#allocation5], 1 }

</bundles_post_ra>
